<compile_context>
chip_gen: v6e
topology: v6e:2x2x1
jax: 0.10.0
libtpu: 0.0.40
codegen_flags: <defaults>
</compile_context>

<pallas_src>
import jax
import jax.numpy as jnp
from jax.experimental import pallas as pl
from jax.experimental.pallas import tpu as pltpu

GeneratorNoiseDim = 50
GeneratorInputLayerOutputSize = 100   # H
BN_EPS = 1e-5


def _round_up(x, m):
    return (x + m - 1) // m * m


def _batchnorm_relu(h, gamma, beta):
    """Training-mode BatchNorm1d + ReLU, one-pass stats, f32 math.

    h: (B, F) f32.  Padded (all-zero) columns stay exactly zero:
    mean=0, E[x^2]=0, var=0 -> normed=0 -> gamma*0+0=0 -> relu(0)=0.
    """
    inv_b = 1.0 / h.shape[0]                       # static Python float
    mean = jnp.sum(h, axis=0, keepdims=True) * inv_b
    mean_sq = jnp.sum(h * h, axis=0, keepdims=True) * inv_b
    var = mean_sq - mean * mean                    # biased batch variance
    normed = (h - mean) * jax.lax.rsqrt(var + BN_EPS)
    return jnp.maximum(gamma * normed + beta, 0.0)


def generator_kernel(
    noise_ref, label_ref,
    w1_ref, b1_ref, g1_ref, be1_ref,
    w2_ref, b2_ref, g2_ref, be2_ref,
    w3_ref, b3_ref,
    out_ref,
):
    # Branch 1: noise (B, 128 bf16) @ w1 (128, 128 bf16) -> f32 acc -> BN -> ReLU
    h1 = jnp.dot(noise_ref[...], w1_ref[...],
                 preferred_element_type=jnp.float32) + b1_ref[...]
    x1 = _batchnorm_relu(h1, g1_ref[...], be1_ref[...])

    # Branch 2: label (B, LP bf16) @ w2 (LP, 128 bf16) -> f32 acc -> BN -> ReLU
    h2 = jnp.dot(label_ref[...], w2_ref[...],
                 preferred_element_type=jnp.float32) + b2_ref[...]
    y = _batchnorm_relu(h2, g2_ref[...], be2_ref[...])

    # concat([x1, y], 1) @ W3.T + b3 as a single K=256 MXU pass.
    # Both halves are 128-lane aligned so the concat is a cheap lane-aligned copy.
    x2 = jnp.concatenate(
        [x1.astype(jnp.bfloat16), y.astype(jnp.bfloat16)], axis=1)   # (B, 256) bf16
    h3 = jnp.dot(x2, w3_ref[...],
                 preferred_element_type=jnp.float32) + b3_ref[...]

    # relu then tanh (as in the original forward); f32 math, lane-dense store.
    out_ref[...] = jnp.tanh(jnp.maximum(h3, 0.0))


def prepare_params(params):
    """One-time prep: transpose to (in, out), split/stitch w3, zero-pad every
    feature dim to a multiple of 128, cast matmul weights to bf16."""
    H = GeneratorInputLayerOutputSize
    HP = _round_up(H, 128)                      # 128
    ND = GeneratorNoiseDim
    NP = _round_up(ND, 128)                     # 128
    L = params["w2"].shape[1]
    LP = _round_up(L, 128)
    OUT = params["w3"].shape[0]
    OUTP = _round_up(OUT, 128)

    f32 = jnp.float32

    w1t = jnp.zeros((NP, HP), f32).at[:ND, :H].set(params["w1"].T.astype(f32))
    w2t = jnp.zeros((LP, HP), f32).at[:L, :H].set(params["w2"].T.astype(f32))

    w3t = params["w3"].T.astype(f32)            # (2H, OUT)
    w3p = jnp.zeros((2 * HP, OUTP), f32)
    w3p = w3p.at[:H, :OUT].set(w3t[:H])         # rows multiplying x1
    w3p = w3p.at[HP:HP + H, :OUT].set(w3t[H:])  # rows multiplying y
    # rows [H:HP] and [HP+H:2HP] stay zero -> padded activation lanes are inert.

    def rowpad(v, n):
        return jnp.zeros((1, n), f32).at[0, :v.shape[0]].set(v.astype(f32))

    return {
        "w1": w1t.astype(jnp.bfloat16),
        "b1": rowpad(params["b1"], HP),
        "g1": rowpad(params["g1"], HP),        # padded gamma/beta are 0 -> inert
        "be1": rowpad(params["be1"], HP),
        "w2": w2t.astype(jnp.bfloat16),
        "b2": rowpad(params["b2"], HP),
        "g2": rowpad(params["g2"], HP),
        "be2": rowpad(params["be2"], HP),
        "w3": w3p.astype(jnp.bfloat16),
        "b3": rowpad(params["b3"], OUTP),
        "dims": (ND, L, OUT, NP, LP, HP, OUTP),
    }


def generator_forward(noise, label, prepped):
    """noise: (B, 50), label: (B, L) float. Returns (B, OUT) f32."""
    nd, L, OUT, NP, LP, HP, OUTP = prepped["dims"]
    B = noise.shape[0]

    # Lane-dense, bf16 activations for the MXU.
    noise_p = jnp.pad(noise.astype(jnp.bfloat16), ((0, 0), (0, NP - nd)))
    label_p = jnp.pad(label.astype(jnp.bfloat16), ((0, 0), (0, LP - L)))

    args = (
        noise_p, label_p,
        prepped["w1"], prepped["b1"], prepped["g1"], prepped["be1"],
        prepped["w2"], prepped["b2"], prepped["g2"], prepped["be2"],
        prepped["w3"], prepped["b3"],
    )

    vmem = pl.BlockSpec(memory_space=pltpu.MemorySpace.VMEM)
    out_p = pl.pallas_call(
        generator_kernel,
        out_shape=jax.ShapeDtypeStruct((B, OUTP), jnp.float32),
        in_specs=[vmem] * len(args),
        out_specs=vmem,
        # Whole batch resident in one invocation so BatchNorm sees global batch
        # stats.  When scaling B into the thousands, raise vmem_limit_bytes via
        # pltpu.CompilerParams (budget against 64 MiB on v7x, 128 MiB on v5e/v6e).
    )(*args)

    return out_p[:, :OUT]


def init_params(key, label_size, output_size, mean=0.0, std=0.02):
    """Synthetic init mirroring Generator.weight_init(mean, std):
    Linear weights ~ N(mean, std), Linear biases zero; BatchNorm gamma=1, beta=0."""
    H = GeneratorInputLayerOutputSize
    k1, k2, k3 = jax.random.split(key, 3)
    return {
        "w1": mean + std * jax.random.normal(k1, (H, GeneratorNoiseDim), jnp.float32),
        "b1": jnp.zeros((H,), jnp.float32),
        "g1": jnp.ones((H,), jnp.float32),
        "be1": jnp.zeros((H,), jnp.float32),
        "w2": mean + std * jax.random.normal(k2, (H, label_size), jnp.float32),
        "b2": jnp.zeros((H,), jnp.float32),
        "g2": jnp.ones((H,), jnp.float32),
        "be2": jnp.zeros((H,), jnp.float32),
        "w3": mean + std * jax.random.normal(k3, (output_size, 2 * H), jnp.float32),
        "b3": jnp.zeros((output_size,), jnp.float32),
    }


def _reference(noise, label, params):
    # Pure-JAX f32 reference of the PyTorch forward (training-mode BN).
    def bn_relu(h, g, b):
        m = jnp.mean(h, axis=0, keepdims=True)
        v = jnp.mean((h - m) ** 2, axis=0, keepdims=True)
        return jnp.maximum(g * (h - m) * jax.lax.rsqrt(v + BN_EPS) + b, 0.0)

    x1 = bn_relu(noise @ params["w1"].T + params["b1"], params["g1"], params["be1"])
    y = bn_relu(label @ params["w2"].T + params["b2"], params["g2"], params["be2"])
    x2 = jnp.concatenate([x1, y], axis=1)
    return jnp.tanh(jnp.maximum(x2 @ params["w3"].T + params["b3"], 0.0))


if __name__ == "__main__":
    B = 8                 # batch (kernel is designed to scale B per call)
    LABEL_SIZE = 16       # LabelSize (one-hot width)
    OUTPUT_SIZE = 103     # GeneratorOutputSize (e.g. Pavia band count; exercises output padding)

    key = jax.random.PRNGKey(0)
    kp, kn, kl = jax.random.split(key, 3)

    params = init_params(kp, LABEL_SIZE, OUTPUT_SIZE, mean=0.0, std=0.02)
    prepped = prepare_params(params)   # done once, reused every forward

    noise = jax.random.normal(kn, (B, GeneratorNoiseDim), jnp.float32)
    label_idx = jax.random.randint(kl, (B,), 0, LABEL_SIZE)
    label = jax.nn.one_hot(label_idx, LABEL_SIZE, dtype=jnp.float32)

    out = generator_forward(noise, label, prepped)
    out = jax.block_until_ready(out)

    ref = _reference(noise, label, params)
    assert out.shape == (B, OUTPUT_SIZE), out.shape
    # bf16 matmul operands vs f32 reference -> loose but meaningful tolerance.
    max_err = float(jnp.max(jnp.abs(out - ref)))
    assert max_err < 2e-2, f"max abs err {max_err}"

    print("KERNEL_OK")
</pallas_src>

<mosaic_0001>
module attributes {stable_mosaic.version = 11 : i64} {
  func.func @generator_kernel(%arg0: memref<8x128xbf16, #tpu.memory_space<vmem>>, %arg1: memref<8x128xbf16, #tpu.memory_space<vmem>>, %arg2: memref<128x128xbf16, #tpu.memory_space<vmem>>, %arg3: memref<1x128xf32, #tpu.memory_space<vmem>>, %arg4: memref<1x128xf32, #tpu.memory_space<vmem>>, %arg5: memref<1x128xf32, #tpu.memory_space<vmem>>, %arg6: memref<128x128xbf16, #tpu.memory_space<vmem>>, %arg7: memref<1x128xf32, #tpu.memory_space<vmem>>, %arg8: memref<1x128xf32, #tpu.memory_space<vmem>>, %arg9: memref<1x128xf32, #tpu.memory_space<vmem>>, %arg10: memref<256x128xbf16, #tpu.memory_space<vmem>>, %arg11: memref<1x128xf32, #tpu.memory_space<vmem>>, %arg12: memref<8x128xf32, #tpu.memory_space<vmem>>) attributes {dimension_semantics = [], scalar_prefetch = 0 : i64, scratch_operands = 0 : i64, tpu.core_type = #tpu.core_type<tc>} {
    %c0 = arith.constant 0 : index
    %c0_0 = arith.constant 0 : index
    %0 = vector.load %arg0[%c0, %c0_0] : memref<8x128xbf16, #tpu.memory_space<vmem>>, vector<8x128xbf16>
    %c0_1 = arith.constant 0 : index
    %c0_2 = arith.constant 0 : index
    %1 = vector.load %arg2[%c0_1, %c0_2] : memref<128x128xbf16, #tpu.memory_space<vmem>>, vector<128x128xbf16>
    %cst = arith.constant dense<0.000000e+00> : vector<8x128xf32>
    %2 = tpu.matmul %0, %1, %cst {dimension_numbers = #tpu.dot_dimension_numbers<[1], [0], [0], [1], [0, 0, 1, 1], [], []>} : vector<8x128xbf16>, vector<128x128xbf16>, vector<8x128xf32> -> vector<8x128xf32>
    %c0_3 = arith.constant 0 : index
    %c0_4 = arith.constant 0 : index
    %3 = vector.load %arg3[%c0_3, %c0_4] : memref<1x128xf32, #tpu.memory_space<vmem>>, vector<1x128xf32>
    %4 = vector.broadcast %3 : vector<1x128xf32> to vector<8x128xf32>
    %5 = arith.addf %2, %4 : vector<8x128xf32>
    %c0_5 = arith.constant 0 : index
    %c0_6 = arith.constant 0 : index
    %6 = vector.load %arg4[%c0_5, %c0_6] : memref<1x128xf32, #tpu.memory_space<vmem>>, vector<1x128xf32>
    %c0_7 = arith.constant 0 : index
    %c0_8 = arith.constant 0 : index
    %7 = vector.load %arg5[%c0_7, %c0_8] : memref<1x128xf32, #tpu.memory_space<vmem>>, vector<1x128xf32>
    %cst_9 = arith.constant dense<0.000000e+00> : vector<128xf32>
    %8 = vector.multi_reduction <add>, %5, %cst_9 [0] : vector<8x128xf32> to vector<128xf32>
    %9 = vector.shape_cast %8 : vector<128xf32> to vector<1x128xf32>
    %cst_10 = arith.constant 1.250000e-01 : f32
    %10 = vector.broadcast %cst_10 : f32 to vector<1x128xf32>
    %11 = arith.mulf %9, %10 : vector<1x128xf32>
    %12 = arith.mulf %5, %5 : vector<8x128xf32>
    %cst_11 = arith.constant dense<0.000000e+00> : vector<128xf32>
    %13 = vector.multi_reduction <add>, %12, %cst_11 [0] : vector<8x128xf32> to vector<128xf32>
    %14 = vector.shape_cast %13 : vector<128xf32> to vector<1x128xf32>
    %cst_12 = arith.constant 1.250000e-01 : f32
    %15 = vector.broadcast %cst_12 : f32 to vector<1x128xf32>
    %16 = arith.mulf %14, %15 : vector<1x128xf32>
    %17 = arith.mulf %11, %11 : vector<1x128xf32>
    %18 = arith.subf %16, %17 : vector<1x128xf32>
    %19 = vector.broadcast %11 : vector<1x128xf32> to vector<8x128xf32>
    %20 = arith.subf %5, %19 : vector<8x128xf32>
    %cst_13 = arith.constant 9.99999974E-6 : f32
    %21 = vector.broadcast %cst_13 : f32 to vector<1x128xf32>
    %22 = arith.addf %18, %21 : vector<1x128xf32>
    %23 = math.rsqrt %22 : vector<1x128xf32>
    %24 = vector.broadcast %23 : vector<1x128xf32> to vector<8x128xf32>
    %25 = arith.mulf %20, %24 : vector<8x128xf32>
    %26 = vector.broadcast %6 : vector<1x128xf32> to vector<8x128xf32>
    %27 = arith.mulf %26, %25 : vector<8x128xf32>
    %28 = vector.broadcast %7 : vector<1x128xf32> to vector<8x128xf32>
    %29 = arith.addf %27, %28 : vector<8x128xf32>
    %cst_14 = arith.constant 0.000000e+00 : f32
    %30 = vector.broadcast %cst_14 : f32 to vector<8x128xf32>
    %31 = arith.maximumf %29, %30 : vector<8x128xf32>
    %c0_15 = arith.constant 0 : index
    %c0_16 = arith.constant 0 : index
    %32 = vector.load %arg1[%c0_15, %c0_16] : memref<8x128xbf16, #tpu.memory_space<vmem>>, vector<8x128xbf16>
    %c0_17 = arith.constant 0 : index
    %c0_18 = arith.constant 0 : index
    %33 = vector.load %arg6[%c0_17, %c0_18] : memref<128x128xbf16, #tpu.memory_space<vmem>>, vector<128x128xbf16>
    %cst_19 = arith.constant dense<0.000000e+00> : vector<8x128xf32>
    %34 = tpu.matmul %32, %33, %cst_19 {dimension_numbers = #tpu.dot_dimension_numbers<[1], [0], [0], [1], [0, 0, 1, 1], [], []>} : vector<8x128xbf16>, vector<128x128xbf16>, vector<8x128xf32> -> vector<8x128xf32>
    %c0_20 = arith.constant 0 : index
    %c0_21 = arith.constant 0 : index
    %35 = vector.load %arg7[%c0_20, %c0_21] : memref<1x128xf32, #tpu.memory_space<vmem>>, vector<1x128xf32>
    %36 = vector.broadcast %35 : vector<1x128xf32> to vector<8x128xf32>
    %37 = arith.addf %34, %36 : vector<8x128xf32>
    %c0_22 = arith.constant 0 : index
    %c0_23 = arith.constant 0 : index
    %38 = vector.load %arg8[%c0_22, %c0_23] : memref<1x128xf32, #tpu.memory_space<vmem>>, vector<1x128xf32>
    %c0_24 = arith.constant 0 : index
    %c0_25 = arith.constant 0 : index
    %39 = vector.load %arg9[%c0_24, %c0_25] : memref<1x128xf32, #tpu.memory_space<vmem>>, vector<1x128xf32>
    %cst_26 = arith.constant dense<0.000000e+00> : vector<128xf32>
    %40 = vector.multi_reduction <add>, %37, %cst_26 [0] : vector<8x128xf32> to vector<128xf32>
    %41 = vector.shape_cast %40 : vector<128xf32> to vector<1x128xf32>
    %cst_27 = arith.constant 1.250000e-01 : f32
    %42 = vector.broadcast %cst_27 : f32 to vector<1x128xf32>
    %43 = arith.mulf %41, %42 : vector<1x128xf32>
    %44 = arith.mulf %37, %37 : vector<8x128xf32>
    %cst_28 = arith.constant dense<0.000000e+00> : vector<128xf32>
    %45 = vector.multi_reduction <add>, %44, %cst_28 [0] : vector<8x128xf32> to vector<128xf32>
    %46 = vector.shape_cast %45 : vector<128xf32> to vector<1x128xf32>
    %cst_29 = arith.constant 1.250000e-01 : f32
    %47 = vector.broadcast %cst_29 : f32 to vector<1x128xf32>
    %48 = arith.mulf %46, %47 : vector<1x128xf32>
    %49 = arith.mulf %43, %43 : vector<1x128xf32>
    %50 = arith.subf %48, %49 : vector<1x128xf32>
    %51 = vector.broadcast %43 : vector<1x128xf32> to vector<8x128xf32>
    %52 = arith.subf %37, %51 : vector<8x128xf32>
    %cst_30 = arith.constant 9.99999974E-6 : f32
    %53 = vector.broadcast %cst_30 : f32 to vector<1x128xf32>
    %54 = arith.addf %50, %53 : vector<1x128xf32>
    %55 = math.rsqrt %54 : vector<1x128xf32>
    %56 = vector.broadcast %55 : vector<1x128xf32> to vector<8x128xf32>
    %57 = arith.mulf %52, %56 : vector<8x128xf32>
    %58 = vector.broadcast %38 : vector<1x128xf32> to vector<8x128xf32>
    %59 = arith.mulf %58, %57 : vector<8x128xf32>
    %60 = vector.broadcast %39 : vector<1x128xf32> to vector<8x128xf32>
    %61 = arith.addf %59, %60 : vector<8x128xf32>
    %cst_31 = arith.constant 0.000000e+00 : f32
    %62 = vector.broadcast %cst_31 : f32 to vector<8x128xf32>
    %63 = arith.maximumf %61, %62 : vector<8x128xf32>
    %64 = arith.truncf %31 : vector<8x128xf32> to vector<8x128xbf16>
    %65 = arith.truncf %63 : vector<8x128xf32> to vector<8x128xbf16>
    %66 = tpu.concatenate %64, %65 in 1 : vector<8x128xbf16>, vector<8x128xbf16> -> vector<8x256xbf16>
    %c0_32 = arith.constant 0 : index
    %c0_33 = arith.constant 0 : index
    %67 = vector.load %arg10[%c0_32, %c0_33] : memref<256x128xbf16, #tpu.memory_space<vmem>>, vector<256x128xbf16>
    %cst_34 = arith.constant dense<0.000000e+00> : vector<8x128xf32>
    %68 = tpu.matmul %66, %67, %cst_34 {dimension_numbers = #tpu.dot_dimension_numbers<[1], [0], [0], [1], [0, 0, 1, 1], [], []>} : vector<8x256xbf16>, vector<256x128xbf16>, vector<8x128xf32> -> vector<8x128xf32>
    %c0_35 = arith.constant 0 : index
    %c0_36 = arith.constant 0 : index
    %69 = vector.load %arg11[%c0_35, %c0_36] : memref<1x128xf32, #tpu.memory_space<vmem>>, vector<1x128xf32>
    %70 = vector.broadcast %69 : vector<1x128xf32> to vector<8x128xf32>
    %71 = arith.addf %68, %70 : vector<8x128xf32>
    %cst_37 = arith.constant 0.000000e+00 : f32
    %72 = vector.broadcast %cst_37 : f32 to vector<8x128xf32>
    %73 = arith.maximumf %71, %72 : vector<8x128xf32>
    %74 = math.tanh %73 : vector<8x128xf32>
    %c0_38 = arith.constant 0 : index
    %c0_39 = arith.constant 0 : index
    %75 = vector.load %arg12[%c0_38, %c0_39] : memref<8x128xf32, #tpu.memory_space<vmem>>, vector<8x128xf32>
    tpu.vector_store %arg12[%c0_38, %c0_39], %74 {strides = array<i32>} : memref<8x128xf32, #tpu.memory_space<vmem>>, vector<8x128xf32>,
    return
  }
}

</mosaic_0001>

<bundles_post_ra>
// kernel: tpu_custom_call.1
= control target key start
LH: loop header
LB: loop body
LE: loop exit
PB: predicated region body
PF: predicated region fallthrough
CT: control target
= control target key end

     0   :  { %17 = vsyncpa [#allocation3], 0  ;;  %s1022_s0 = inlined_call_operand.hbm [shape: bf16[8,128], index: 0, kind: input, shape index: {}]   ;;  %s1023_s1 = inlined_call_operand.hbm [shape: bf16[8,128], index: 1, kind: input, shape index: {}]   ;;  %s1024_s2 = inlined_call_operand.hbm [shape: bf16[128,128], index: 2, kind: input, shape index: {}]   ;;  %s1025_s3 = inlined_call_operand.vmem [shape: f32[1,128], index: 3, kind: input, shape index: {}]   ;;  %s1026_s4 = inlined_call_operand.vmem [shape: f32[1,128], index: 4, kind: input, shape index: {}]   ;;  %s1027_s5 = inlined_call_operand.vmem [shape: f32[1,128], index: 5, kind: input, shape index: {}]   ;;  %s1028_s6 = inlined_call_operand.hbm [shape: bf16[128,128], index: 6, kind: input, shape index: {}]   ;;  %s1029_s7 = inlined_call_operand.vmem [shape: f32[1,128], index: 7, kind: input, shape index: {}]   ;;  %s1030_s8 = inlined_call_operand.vmem [shape: f32[1,128], index: 8, kind: input, shape index: {}]   ;;  %s1031_s9 = inlined_call_operand.vmem [shape: f32[1,128], index: 9, kind: input, shape index: {}]   ;;  %s1032_s10 = inlined_call_operand.hbm [shape: bf16[256,128], index: 10, kind: input, shape index: {}]   ;;  %s1033_s11 = inlined_call_operand.vmem [shape: f32[1,128], index: 11, kind: input, shape index: {}]   ;;  %s1034_s12 = inlined_call_operand.hbm [shape: f32[8,128], index: 12, kind: output, shape index: {}]  }
   0x1   :  { %18 = vsyncpa [#allocation6], 0 }
   0x2   :  { %19 = vsyncpa [#allocation9], 0 }
   0x3   :  { %20 = vsyncpa [#allocation4], 0  ;;  %s899_s21 = smov [#allocation5]  }
   0x4   :  { %s37_s22 = sshll.u32 %s899_s21, 4  ;;  %s38_s22 = int_to_ptr.vmem [resolvable:$true] %s37_s22 }
   0x5   :  { %s779_s23 = scalar_lea.vmem %s38_s22, 64  ;;  %p784_p1 = scmp.lt.s32.totalorder %s38_s22, %s38_s22 }
   0x6   :  { %p780_p0 = scmp.ne.s32.totalorder %s38_s22, %s779_s23  ;;  %p785_p2 = scmp.lt.s32.totalorder %s779_s23, %s779_s23 }
   0x8   :  { %p786_p3 = por %p785_p2, %p784_p1 }
   0xa   :  { %p787_p4 = pnand %p786_p3, %p780_p0 }
   0xc   :  { %790 = shalt.err (!%p787_p4)
}
   0xd   :  { %40 = dma.hbm_to_vmem [thread:$0]  %s1023_s1, 64, %s38_s22, [#allocation6]  }
   0xe   :  { %s900_s26 = smov [#allocation8]   ;;  %s901_s28 = smov [#allocation2]  }
   0xf   :  { %s64_s27 = sshll.u32 %s900_s26, 4  ;;  %s27_s29 = sshll.u32 %s901_s28, 4  ;;  %s65_s27 = int_to_ptr.vmem [resolvable:$true] %s64_s27  ;;  %s28_s29 = int_to_ptr.vmem [resolvable:$true] %s27_s29 }
  0x10   :  { %s799_s30 = scalar_lea.vmem %s65_s27, 1024  ;;  %p804_p6 = scmp.lt.s32.totalorder %s65_s27, %s65_s27 }
  0x11   :  { %p800_p5 = scmp.ne.s32.totalorder %s65_s27, %s799_s30  ;;  %p805_p7 = scmp.lt.s32.totalorder %s799_s30, %s799_s30 }
  0x13   :  { %p806_p8 = por %p805_p7, %p804_p6 }
  0x15   :  { %p807_p9 = pnand %p806_p8, %p800_p5 }
  0x17   :  { %810 = shalt.err (!%p807_p9)
}
  0x18   :  { %s902_s13 = smov 64   ;;  %s903_s14 = smov 4  }
  0x19   :  { %70 = dma.hbm_to_vmem [thread:$0]  %s1028_s6, 1024, %s65_s27, [#allocation9], %s902_s13, %s902_s13, %s903_s14  }
  0x1a   :  { %s819_s1 = scalar_lea.vmem %s28_s29, 64  ;;  %p824_p11 = scmp.lt.s32.totalorder %s28_s29, %s28_s29 }
  0x1b   :  { %p820_p10 = scmp.ne.s32.totalorder %s28_s29, %s819_s1  ;;  %p825_p12 = scmp.lt.s32.totalorder %s819_s1, %s819_s1 }
  0x1d   :  { %p826_p13 = por %p825_p12, %p824_p11 }
  0x1f   :  { %p827_p0 = pnand %p826_p13, %p820_p10 }
  0x21   :  { %830 = shalt.err (!%p827_p0)
}
  0x22   :  { %30 = dma.hbm_to_vmem [thread:$0]  %s1022_s0, 64, %s28_s29, [#allocation3]  }
  0x23   :  { %s904_s19 = smov [#allocation7]   ;;  %s905_s21 = smov [#allocation10]  }
  0x24   :  { %s46_s20 = sshll.u32 %s904_s19, 4  ;;  %s82_s22 = sshll.u32 %s905_s21, 4  ;;  %s47_s20 = int_to_ptr.vmem [resolvable:$true] %s46_s20  ;;  %s83_s22 = int_to_ptr.vmem [resolvable:$true] %s82_s22 }
  0x25   :  { %s839_s23 = scalar_lea.vmem %s47_s20, 1024  ;;  %p844_p2 = scmp.lt.s32.totalorder %s47_s20, %s47_s20 }
  0x26   :  { %p840_p1 = scmp.ne.s32.totalorder %s47_s20, %s839_s23  ;;  %p845_p3 = scmp.lt.s32.totalorder %s839_s23, %s839_s23 }
  0x28   :  { %p846_p4 = por %p845_p3, %p844_p2 }
  0x2a   :  { %p847_p5 = pnand %p846_p4, %p840_p1 }
  0x2c   :  { %850 = shalt.err (!%p847_p5)
}
  0x2d   :  { %52 = dma.hbm_to_vmem [thread:$0]  %s1024_s2, 1024, %s47_s20, [#allocation6], %s902_s13, %s902_s13, %s903_s14  }
  0x2e   :  { %s859_s0 = scalar_lea.vmem %s83_s22, 2048  ;;  %p864_p7 = scmp.lt.s32.totalorder %s83_s22, %s83_s22 }
  0x2f   :  { %p860_p6 = scmp.ne.s32.totalorder %s83_s22, %s859_s0  ;;  %p865_p8 = scmp.lt.s32.totalorder %s859_s0, %s859_s0 }
  0x31   :  { %p866_p9 = por %p865_p8, %p864_p7 }
  0x33   :  { %p867_p10 = pnand %p866_p9, %p860_p6 }
  0x35   :  { %870 = shalt.err (!%p867_p10)
}
  0x36   :  { %88 = dma.hbm_to_vmem [thread:$0]  %s1032_s10, 2048, %s83_s22, [#allocation9], %s902_s13, %s902_s13, %s903_s14  }
  0x37   :  { %891 = dma.done.wait [#allocation3], 64  }
  0x38   :  { %892 = vsyncadd [#allocation3], 4294967232 }
  0x39   :  { %893 = dma.done.wait [#allocation6], 1088  }
  0x3a   :  { %894 = vsyncadd [#allocation6], 4294966208 }
  0x3b   :  { %895 = dma.done.wait [#allocation9], 3072  }
  0x3c   :  { %896 = vsyncadd [#allocation9], 4294964224  ;;  %v906_v0 = vmov 0.0   ;;  %vm907_vm0 = vmmov 0   ;;  %v733_v1 = vld [vmem:[#allocation7 + $0x38] sm:$0xff]   ;;  %v735_v3 = vld [vmem:[#allocation7 + $0x30] sm:$0xff]  }
  0x3d   :  { %683 = vmatprep.subr.bf16.mxu0 %v906_v0  ;;  %703 = vmatprep.subr.bf16.mxu1 %v906_v0  ;;  %v734_v2 = vld [vmem:[#allocation8 + $0x38] sm:$0xff]   ;;  %v736_v4 = vld [vmem:[#allocation8 + $0x30] sm:$0xff]   ;;  %v737_v5 = vld [vmem:[#allocation7 + $0x28] sm:$0xff]  }
  0x3e   :  { %699 = vmatprep.mubr.msk.bf16.mxu0 %vm907_vm0, %v906_v0  ;;  %719 = vmatprep.mubr.msk.bf16.mxu1 %vm907_vm0, %v906_v0  ;;  %v738_v6 = vld [vmem:[#allocation8 + $0x28] sm:$0xff]   ;;  %v739_v7 = vld [vmem:[#allocation7 + $0x20] sm:$0xff]   ;;  %v741_v9 = vld [vmem:[#allocation7 + $0x18] sm:$0xff]  }
  0x3f   :  { %684 = vmatpush3.bf16.msra.mxu0 %v733_v1  ;;  %704 = vmatpush3.bf16.msra.mxu1 %v734_v2  ;;  %v740_v8 = vld [vmem:[#allocation8 + $0x20] sm:$0xff]   ;;  %v742_v10 = vld [vmem:[#allocation8 + $0x18] sm:$0xff]   ;;  %v743_v11 = vld [vmem:[#allocation7 + $0x10] sm:$0xff]  }
  0x40   :  { %685 = vmatprep.subr.bf16.mxu0 %v906_v0  ;;  %705 = vmatprep.subr.bf16.mxu1 %v906_v0  ;;  %v744_v12 = vld [vmem:[#allocation8 + $0x10] sm:$0xff]   ;;  %v745_v13 = vld [vmem:[#allocation7 + $0x8] sm:$0xff]   ;;  %v747_v15 = vld [vmem:[#allocation7] sm:$0xff]  }
  0x41   :  { %v746_v14 = vld [vmem:[#allocation8 + $0x8] sm:$0xff]   ;;  %v748_v16 = vld [vmem:[#allocation8] sm:$0xff]   ;;  %v107_v17 = vld [vmem:[#allocation2] sm:$0xf] }
  0x42   :  { %v257_v18 = vld [vmem:[#allocation5] sm:$0xf]  ;;  %v751_v21 = vld [vmem:[#allocation10 + $0x70] sm:$0xff]   ;;  %v753_v23 = vld [vmem:[#allocation10 + $0x68] sm:$0xff]  }
  0x43   :  { %686 = vmatpush3.bf16.msra.mxu0 %v735_v3  ;;  %706 = vmatpush3.bf16.msra.mxu1 %v736_v4  ;;  %v749_v19 = vld [vmem:[#allocation10 + $0x78] sm:$0xff]   ;;  %v752_v22 = vld [vmem:[#allocation10 + $0x30] sm:$0xff]   ;;  %v754_v24 = vld [vmem:[#allocation10 + $0x28] sm:$0xff]  }
  0x44   :  { %687 = vmatprep.subr.bf16.mxu0 %v906_v0  ;;  %707 = vmatprep.subr.bf16.mxu1 %v906_v0  ;;  %v750_v20 = vld [vmem:[#allocation10 + $0x38] sm:$0xff]   ;;  %v755_v25 = vld [vmem:[#allocation10 + $0x60] sm:$0xff]   ;;  %v759_v29 = vld [vmem:[#allocation10 + $0x50] sm:$0xff]  }
  0x45   :  { %v756_v26 = vld [vmem:[#allocation10 + $0x20] sm:$0xff]   ;;  %v757_v27 = vld [vmem:[#allocation10 + $0x58] sm:$0xff]   ;;  %v760_v30 = vld [vmem:[#allocation10 + $0x10] sm:$0xff]  }
  0x46   :  { %v758_v28 = vld [vmem:[#allocation10 + $0x18] sm:$0xff]   ;;  %v761_v31 = vld [vmem:[#allocation10 + $0x48] sm:$0xff]   ;;  %v763_v33 = vld [vmem:[#allocation10 + $0x40] sm:$0xff]  }
  0x47   :  { %688 = vmatpush3.bf16.msra.mxu0 %v737_v5  ;;  %708 = vmatpush3.bf16.msra.mxu1 %v738_v6  ;;  %v762_v32 = vld [vmem:[#allocation10 + $0x8] sm:$0xff]   ;;  %v764_v34 = vld [vmem:[#allocation10] sm:$0xff]   ;;  %v604_v35 = vld [vmem:[%s1025_s3] ss:$0 sm:$0xff] }
  0x48   :  { %689 = vmatprep.subr.bf16.mxu0 %v906_v0  ;;  %709 = vmatprep.subr.bf16.mxu1 %v906_v0  ;;  %v615_v36 = vld [vmem:[%s1029_s7] ss:$0 sm:$0xff] }
  0x4b   :  { %690 = vmatpush3.bf16.msra.mxu0 %v739_v7  ;;  %710 = vmatpush3.bf16.msra.mxu1 %v740_v8 }
  0x4c   :  { %691 = vmatprep.subr.bf16.mxu0 %v906_v0  ;;  %711 = vmatprep.subr.bf16.mxu1 %v906_v0 }
  0x4f   :  { %692 = vmatpush3.bf16.msra.mxu0 %v741_v9  ;;  %712 = vmatpush3.bf16.msra.mxu1 %v742_v10 }
  0x50   :  { %693 = vmatprep.subr.bf16.mxu0 %v906_v0  ;;  %713 = vmatprep.subr.bf16.mxu1 %v906_v0 }
  0x53   :  { %694 = vmatpush3.bf16.msra.mxu0 %v743_v11  ;;  %714 = vmatpush3.bf16.msra.mxu1 %v744_v12 }
  0x54   :  { %695 = vmatprep.subr.bf16.mxu0 %v906_v0  ;;  %715 = vmatprep.subr.bf16.mxu1 %v906_v0 }
  0x57   :  { %696 = vmatpush3.bf16.msra.mxu0 %v745_v13  ;;  %716 = vmatpush3.bf16.msra.mxu1 %v746_v14 }
  0x58   :  { %697 = vmatprep.subr.bf16.mxu0 %v906_v0  ;;  %717 = vmatprep.subr.bf16.mxu1 %v906_v0 }
  0x5b   :  { %698 = vmatpush3.bf16.msra.mxu0 %v747_v15  ;;  %718 = vmatpush3.bf16.msra.mxu1 %v748_v16 }
  0x5c   :  { %661 = vmatprep.subr.bf16.mxu0 %v749_v19 }
  0x5e   :  { %700 = vmatmul.mubr.bf16.vlgmr.msra.gmra.mxu0 %v107_v17  ;;  %720 = vmatmul.mubr.bf16.vlgmr.msra.gmra.mxu1 %v257_v18 }
  0x5f   :  { %662 = vmatpush3.bf16.msra.mxu0 %v750_v20 }
  0x60   :  { %663 = vmatprep.subr.bf16.mxu0 %v751_v21 }
  0x63   :  { %664 = vmatpush3.bf16.msra.mxu0 %v752_v22  ;;  %v613_v22 = vld [vmem:[%s1026_s4] ss:$0 sm:$0xff] }
  0x64   :  { %665 = vmatprep.subr.bf16.mxu0 %v753_v23 }
  0x67   :  { %666 = vmatpush3.bf16.msra.mxu0 %v754_v24 }
  0x68   :  { %667 = vmatprep.subr.bf16.mxu0 %v755_v25  ;;  %v624_v25 = vld [vmem:[%s1030_s8] ss:$0 sm:$0xff] }
  0x6b   :  { %668 = vmatpush3.bf16.msra.mxu0 %v756_v26 }
  0x6c   :  { %669 = vmatprep.subr.bf16.mxu0 %v757_v27  ;;  %v614_v27 = vld [vmem:[%s1027_s5] ss:$0 sm:$0xff]  ;;  %s908_s5 = smov [#allocation11]  }
  0x6f   :  { %670 = vmatpush3.bf16.msra.mxu0 %v758_v28  ;;  %v625_v28 = vld [vmem:[%s1031_s9] ss:$0 sm:$0xff]  ;;  %s593_s9 = sshll.u32 %s908_s5, 4  ;;  %s594_s9 = int_to_ptr.vmem [resolvable:$true] %s593_s9 }
  0x70   :  { %671 = vmatprep.subr.bf16.mxu0 %v759_v29  ;;  %s871_s1 = scalar_lea.vmem %s594_s9, 128  ;;  %p876_p12 = scmp.lt.s32.totalorder %s594_s9, %s594_s9 }
  0x71   :  { %p872_p11 = scmp.ne.s32.totalorder %s594_s9, %s871_s1  ;;  %p877_p13 = scmp.lt.s32.totalorder %s871_s1, %s871_s1 }
  0x73   :  { %672 = vmatpush3.bf16.msra.mxu0 %v760_v30  ;;  %p878_p0 = por %p877_p13, %p876_p12 }
  0x74   :  { %673 = vmatprep.subr.bf16.mxu0 %v761_v31 }
  0x75   :  { %p879_p1 = pnand %p878_p0, %p872_p11 }
  0x77   :  { %674 = vmatpush3.bf16.msra.mxu0 %v762_v32 }
  0x78   :  { %675 = vmatprep.subr.bf16.mxu0 %v763_v33 }
  0x7b   :  { %676 = vmatpush3.bf16.msra.mxu0 %v764_v34 }
 0x11e   :  { %v213_v37 = vpop.f32.mrf.mxu0  ;;  %v363_v39 = vpop.f32.mrf.mxu1 }
 0x11f   :  { %v214_v38 = vadd.f32 %v604_v35, %v213_v37  ;;  %v364_v40 = vadd.f32 %v615_v36, %v363_v39 }
 0x120   :  { %v701_v41 = vpop.f32.mrf.mxu0  ;;  %v721_v44 = vpop.f32.mrf.mxu1 }
 0x121   :  { %v221_v42 = vrot.slane %v214_v38, 4  ;;  %v228_v43 = vmul.f32 %v214_v38, %v214_v38  ;;  %v371_v45 = vrot.slane %v364_v40, 4  ;;  %v378_v46 = vmul.f32 %v364_v40, %v364_v40 }
 0x122   :  { %v216_v47 = vpop.f32.mrf.mxu0  ;;  %v366_v50 = vpop.f32.mrf.mxu1 }
 0x123   :  { %v222_v48 = vadd.f32 %v221_v42, %v214_v38  ;;  %v229_v49 = vrot.slane %v228_v43, 4  ;;  %v372_v51 = vadd.f32 %v371_v45, %v364_v40  ;;  %v379_v52 = vrot.slane %v378_v46, 4 }
 0x124   :  { %v702_v53 = vpop.f32.mrf.mxu0  ;;  %v722_v56 = vpop.f32.mrf.mxu1 }
 0x125   :  { %v223_v54 = vrot.slane %v222_v48, 2  ;;  %v230_v55 = vadd.f32 %v229_v49, %v228_v43  ;;  %v373_v57 = vrot.slane %v372_v51, 2  ;;  %v380_v58 = vadd.f32 %v379_v52, %v378_v46 }
 0x127   :  { %v224_v59 = vadd.f32 %v223_v54, %v222_v48  ;;  %v231_v60 = vrot.slane %v230_v55, 2  ;;  %v374_v61 = vadd.f32 %v373_v57, %v372_v51  ;;  %v381_v62 = vrot.slane %v380_v58, 2 }
 0x129   :  { %v225_v63 = vrot.slane %v224_v59, 1  ;;  %v232_v0 = vadd.f32 %v231_v60, %v230_v55  ;;  %v375_v1 = vrot.slane %v374_v61, 1  ;;  %v382_v2 = vadd.f32 %v381_v62, %v380_v58 }
 0x12b   :  { %v226_v3 = vadd.f32 %v225_v63, %v224_v59  ;;  %v233_v4 = vrot.slane %v232_v0, 1  ;;  %v376_v5 = vadd.f32 %v375_v1, %v374_v61  ;;  %v383_v6 = vrot.slane %v382_v2, 1 }
 0x12d   :  { %v227_v7 = vmul.f32 0.125, %v226_v3  ;;  %v234_v8 = vadd.f32 %v233_v4, %v232_v0  ;;  %v377_v9 = vmul.f32 0.125, %v376_v5  ;;  %v384_v10 = vadd.f32 %v383_v6, %v382_v2 }
 0x12f   :  { %v235_v11 = vmul.f32 0.125, %v234_v8  ;;  %v236_v12 = vmul.f32 %v227_v7, %v227_v7  ;;  %v385_v13 = vmul.f32 0.125, %v384_v10  ;;  %v386_v14 = vmul.f32 %v377_v9, %v377_v9 }
 0x130   :  { %v238_v19 = vsub.f32 %v214_v38, %v227_v7  ;;  %v388_v21 = vsub.f32 %v364_v40, %v377_v9  ;;  %v626_v38 = vld [vmem:[%s1033_s11] ss:$0 sm:$0xff] }
 0x131   :  { %v237_v15 = vsub.f32 %v235_v11, %v236_v12  ;;  %v387_v16 = vsub.f32 %v385_v13, %v386_v14 }
 0x133   :  { %v239_v17 = vadd.f32 1e-05, %v237_v15  ;;  %v389_v18 = vadd.f32 1e-05, %v387_v16 }
 0x135   :  { %765 = vrsqrt.f32 %v239_v17 }
 0x136   :  { %767 = vrsqrt.f32 %v389_v18 }
 0x142   :  { %v766_v20 = vpop.eup %765 }
 0x143   :  { %v768_v23 = vpop.eup %767  ;;  %v241_v24 = vmul.f32 %v766_v20, %v238_v19 }
 0x144   :  { %v391_v26 = vmul.f32 %v768_v23, %v388_v21 }
 0x145   :  { %v248_v29 = vmul.f32 %v613_v22, %v241_v24 }
 0x146   :  { %v398_v30 = vmul.f32 %v624_v25, %v391_v26 }
 0x147   :  { %v255_v31 = vadd.f32 %v614_v27, %v248_v29 }
 0x148   :  { %v405_v32 = vadd.f32 %v625_v28, %v398_v30 }
 0x149   :  { %v256_v33 = vmax.f32 %v255_v31, 0.0 }
 0x14a   :  { %v406_v34 = vmax.f32 %v405_v32, 0.0 }
 0x14b   :  { %v407_v35 = vpack.c.bf16 %v256_v33, %v256_v33 }
 0x14c   :  { %v408_v36 = vpack.c.bf16 %v406_v34, %v406_v34 }
 0x14e   :  { %576 = vmatprep.mubr.bf16.mxu0 %v408_v36 }
 0x14f   :  { %577 = vmatmul.mubr.bf16.vlgmr.msra.gmra.mxu0 %v407_v35 }
 0x20f   :  { %v677_v37 = vpop.f32.mrf.mxu0 }
 0x211   :  { %v678_v39 = vpop.f32.mrf.mxu0 }
 0x212   :  { %v679_v40 = vadd.f32 %v678_v39, %v677_v37 }
 0x213   :  { %v680_v41 = vpop.f32.mrf.mxu0 }
 0x214   :  { %v579_v42 = vadd.f32 %v679_v40, %v626_v38 }
 0x215   :  { %v681_v43 = vpop.f32.mrf.mxu0 }
 0x216   :  { %v584_v44 = vmax.f32 %v579_v42, 0.0 }
 0x218   :  { %769 = vtanh.f32 %v584_v44 }
 0x225   :  { %v770_v45 = vpop.eup %769 }
 0x226   :  { %586 = vst [vmem:[#allocation11] sm:$0xff] %v770_v45 }
 0x227   :  { %882 = shalt.err (!%p879_p1)
}
 0x228   :  { %596 = dma.vmem_to_hbm [thread:$0]  %s594_s9, 128, %s1034_s12, [#allocation4]  }
 0x229   :  { %897 = dma.done.wait [#allocation4], 128  }
 0x22a   :  { %898 = vsyncadd [#allocation4], 4294967168 }
 0x22b   :  { %600 = vsyncpa [#allocation3], 1 }
 0x22c   :  { %601 = vsyncpa [#allocation6], 1 }
 0x22d   :  { %602 = vsyncpa [#allocation9], 1 }
 0x22e   :  { %603 = vsyncpa [#allocation4], 1 }

</bundles_post_ra>
